<compile_context>
chip_gen: v7x
topology: tpu7x:2x2x1
jax: 0.10.0
libtpu: 0.0.40
codegen_flags: <defaults>
</compile_context>

<pallas_src>
import functools

import jax
import jax.numpy as jnp
from jax.experimental import pallas as pl
from jax.experimental.pallas import tpu as pltpu


# ----------------------------- kernels --------------------------------------


def _to_f32(x):
    return x if x.dtype == jnp.float32 else x.astype(jnp.float32)


def _fm_kernel(x_ref, o_ref, *, field_size, embed_dim, reduce_sum):
    """Lane-slice path.  x_ref: (tb, F*D) lane-dense block."""
    s = _to_f32(x_ref[:, 0:embed_dim])            # running field sum   (tb, D)
    ssq = s * s                                   # running sum of sq   (tb, D)
    for f in range(1, field_size):
        xf = _to_f32(x_ref[:, f * embed_dim:(f + 1) * embed_dim])
        s = s + xf
        ssq = ssq + xf * xf
    out = 0.5 * (s * s - ssq)                     # (tb, D)
    if reduce_sum:
        out = jnp.sum(out, axis=-1, keepdims=True)  # (tb, 1)
    o_ref[...] = out.astype(o_ref.dtype)


def _fm_kernel_mxu(x_ref, s_mat_ref, o_ref, *, reduce_sum):
    """MXU path: field sum via a stacked-identity (F*D, D) matmul.

    Avoids F-1 unaligned lane-slice relayouts on the XLU; MXU slot is otherwise
    idle for this kernel.  Used when embed_dim is not 128-aligned (auto on v7x).
    """
    x = _to_f32(x_ref[...])                       # (tb, F*D)
    stack_id = s_mat_ref[...]                     # (F*D, D), f32, 0/1 entries
    s = jnp.dot(x, stack_id,
                precision=jax.lax.Precision.HIGHEST,
                preferred_element_type=jnp.float32)              # (tb, D)
    ssq = jnp.dot(x * x, stack_id,
                  precision=jax.lax.Precision.HIGHEST,
                  preferred_element_type=jnp.float32)            # (tb, D)
    out = 0.5 * (s * s - ssq)
    if reduce_sum:
        out = jnp.sum(out, axis=-1, keepdims=True)
    o_ref[...] = out.astype(o_ref.dtype)


# --------------------------- host-side helpers -------------------------------


def _device_kind():
    try:
        return jax.devices()[0].device_kind.lower()
    except Exception:
        return ""


def _default_vmem_limit_bytes():
    """Generation-aware VMEM scoped limit (3/4 of physical, capped at 64 MiB)."""
    try:
        cap = int(pltpu.get_tpu_info().vmem_capacity_bytes)
        return int(min(cap * 3 // 4, 64 * 1024 * 1024))
    except Exception:
        return 48 * 1024 * 1024   # safe on v5e/v6e (128 MiB) and v7x (64 MiB)


def _pick_block_batch(B, FD, itemsize, target_tile_bytes, sublane, want_even_grid):
    """Batch tile so each (lane-padded) input block is ~target bytes."""
    if B <= sublane:
        return B                                  # block == full dims -> legal
    fd_pad = max(((FD + 127) // 128) * 128, 128)
    tb = target_tile_bytes // (fd_pad * max(int(itemsize), 1))
    tb = max(sublane, (tb // sublane) * sublane)  # dtype-native sublane multiple
    tb = min(tb, (B // sublane) * sublane)        # never exceed array extent
    if want_even_grid and tb < B:
        # v7x: prefer an even number of grid steps so both TensorCores are busy.
        while tb > sublane and ((B + tb - 1) // tb) % 2 != 0:
            tb -= sublane
    return int(tb)


# ------------------------------- wrapper -------------------------------------


def base_factorization_machine(
    input_x,
    reduce_sum=True,
    *,
    block_batch=None,
    target_tile_bytes=8 * 1024 * 1024,
    vmem_limit_bytes=None,
    use_mxu_field_sum=None,
):
    """FM second-order interaction.

    input_x: (batch, field, embed)
    returns: (batch, 1) if reduce_sum else (batch, embed)
    """
    B, F, D = input_x.shape
    FD = F * D
    itemsize = jnp.dtype(input_x.dtype).itemsize
    # native sublane tile: 8 (f32), 16 (bf16/fp16), 32 (int8/fp8)
    sublane = max(8, 32 // max(int(itemsize), 1))

    kind = _device_kind()
    is_v7x = "v7" in kind

    if vmem_limit_bytes is None:
        vmem_limit_bytes = _default_vmem_limit_bytes()
    if use_mxu_field_sum is None:
        use_mxu_field_sum = bool(is_v7x and (D % 128 != 0) and F > 1)

    # Lane-dense view of the (contiguous) input; free reshape.
    x2d = input_x.reshape(B, FD)

    if block_batch is not None:
        tb = int(block_batch)
        if B <= sublane:
            tb = B
        else:
            tb = max(sublane, min((tb // sublane) * sublane, (B // sublane) * sublane))
    else:
        tb = _pick_block_batch(B, FD, itemsize, target_tile_bytes, sublane,
                               want_even_grid=is_v7x)

    grid = ((B + tb - 1) // tb,)

    in_specs = [pl.BlockSpec((tb, FD), lambda i: (i, 0))]
    operands = [x2d]
    if use_mxu_field_sum:
        # Stacked identity (F*D, D): x2d @ S == sum over fields.
        s_mat = jnp.tile(jnp.eye(D, dtype=jnp.float32), (F, 1))
        in_specs.append(pl.BlockSpec((FD, D), lambda i: (0, 0)))
        operands.append(s_mat)
        kernel = functools.partial(_fm_kernel_mxu, reduce_sum=reduce_sum)
    else:
        kernel = functools.partial(_fm_kernel, field_size=F, embed_dim=D,
                                   reduce_sum=reduce_sum)

    if reduce_sum:
        out_shape = jax.ShapeDtypeStruct((B, 1), input_x.dtype)
        out_spec = pl.BlockSpec((tb, 1), lambda i: (i, 0))
        out_bytes = B * itemsize
    else:
        out_shape = jax.ShapeDtypeStruct((B, D), input_x.dtype)
        out_spec = pl.BlockSpec((tb, D), lambda i: (i, 0))
        out_bytes = B * D * itemsize

    cost = pl.CostEstimate(
        flops=4 * B * F * D,
        transcendentals=0,
        bytes_accessed=B * FD * itemsize + out_bytes,
    )

    return pl.pallas_call(
        kernel,
        out_shape=out_shape,
        grid_spec=pltpu.PrefetchScalarGridSpec(
            num_scalar_prefetch=0,
            grid=grid,
            in_specs=in_specs,
            out_specs=out_spec,
        ),
        compiler_params=pltpu.CompilerParams(
            dimension_semantics=("parallel",),
            vmem_limit_bytes=int(vmem_limit_bytes),
        ),
        cost_estimate=cost,
    )(*operands)


# ------------------------------- reference -----------------------------------


def _reference(input_x, reduce_sum=True):
    x = input_x.astype(jnp.float32)
    square_of_sum = jnp.sum(x, axis=1) ** 2
    sum_of_square = jnp.sum(x ** 2, axis=1)
    output = square_of_sum - sum_of_square
    if reduce_sum:
        output = jnp.sum(output, axis=1, keepdims=True)
    return 0.5 * output


if __name__ == "__main__":
    key = jax.random.PRNGKey(0)
    # (batch_size, field_size, embed_dim) — module-consistent small shapes
    B, F, D = 2, 4, 32
    x = jax.random.normal(key, (B, F, D), dtype=jnp.float32)

    # reduce_sum=True (module default): (B, 1)
    out_reduce = jax.block_until_ready(base_factorization_machine(x, reduce_sum=True))
    ref_reduce = _reference(x, reduce_sum=True)
    assert out_reduce.shape == (B, 1), out_reduce.shape
    assert jnp.allclose(out_reduce, ref_reduce, atol=1e-3, rtol=1e-3)

    # reduce_sum=False: (B, D)
    out_full = jax.block_until_ready(base_factorization_machine(x, reduce_sum=False))
    ref_full = _reference(x, reduce_sum=False)
    assert out_full.shape == (B, D), out_full.shape
    assert jnp.allclose(out_full, ref_full, atol=1e-3, rtol=1e-3)

    # Tiled / pipelined path: multiple grid steps + partial last block.
    B2 = 40
    x_big = jax.random.normal(jax.random.PRNGKey(0), (B2, F, D), dtype=jnp.float32)
    out2 = jax.block_until_ready(
        base_factorization_machine(x_big, reduce_sum=True, block_batch=16))
    assert out2.shape == (B2, 1), out2.shape
    assert jnp.allclose(out2, _reference(x_big, True), atol=1e-3, rtol=1e-3)
    out3 = jax.block_until_ready(
        base_factorization_machine(x_big, reduce_sum=False, block_batch=16))
    assert out3.shape == (B2, D), out3.shape
    assert jnp.allclose(out3, _reference(x_big, False), atol=1e-3, rtol=1e-3)

    # MXU field-sum path (auto on v7x; forced here so it is always validated).
    out4 = jax.block_until_ready(
        base_factorization_machine(x_big, reduce_sum=True, block_batch=16,
                                   use_mxu_field_sum=True))
    assert out4.shape == (B2, 1), out4.shape
    assert jnp.allclose(out4, _reference(x_big, True), atol=1e-2, rtol=1e-2)

    # bf16 input: exercises dtype-aware (16-row) sublane rounding.
    x_bf16 = jax.random.normal(jax.random.PRNGKey(1), (48, F, D), dtype=jnp.bfloat16)
    out5 = jax.block_until_ready(
        base_factorization_machine(x_bf16, reduce_sum=True, block_batch=16))
    ref5 = _reference(x_bf16, reduce_sum=True)
    assert out5.shape == (48, 1), out5.shape
    assert jnp.allclose(out5.astype(jnp.float32), ref5, atol=5e-1, rtol=5e-2)

    print("KERNEL_OK")
</pallas_src>

<mosaic_0001>
module attributes {stable_mosaic.version = 11 : i64} {
  func.func @_fm_kernel(%arg0: i32, %arg1: memref<2x128xf32, #tpu.memory_space<vmem>>, %arg2: memref<2x1xf32, #tpu.memory_space<vmem>>) attributes {dimension_semantics = [#tpu.dimension_semantics<parallel>], iteration_bounds = array<i64: 1>, scalar_prefetch = 0 : i64, scratch_operands = 0 : i64, tpu.core_type = #tpu.core_type<tc>, window_params = [{transform_indices = @transform_0, window_bounds = array<i64: 2, 128>}, {transform_indices = @transform_1, window_bounds = array<i64: 2, 1>}]} {
    %c0 = arith.constant 0 : index
    %c0_0 = arith.constant 0 : index
    %0 = vector.load %arg1[%c0, %c0_0] : memref<2x128xf32, #tpu.memory_space<vmem>>, vector<2x32xf32>
    %1 = arith.mulf %0, %0 : vector<2x32xf32>
    %c0_1 = arith.constant 0 : index
    %c32 = arith.constant 32 : index
    %2 = vector.load %arg1[%c0_1, %c32] : memref<2x128xf32, #tpu.memory_space<vmem>>, vector<2x32xf32>
    %3 = arith.addf %0, %2 : vector<2x32xf32>
    %4 = arith.mulf %2, %2 : vector<2x32xf32>
    %5 = arith.addf %1, %4 : vector<2x32xf32>
    %c0_2 = arith.constant 0 : index
    %c64 = arith.constant 64 : index
    %6 = vector.load %arg1[%c0_2, %c64] : memref<2x128xf32, #tpu.memory_space<vmem>>, vector<2x32xf32>
    %7 = arith.addf %3, %6 : vector<2x32xf32>
    %8 = arith.mulf %6, %6 : vector<2x32xf32>
    %9 = arith.addf %5, %8 : vector<2x32xf32>
    %c0_3 = arith.constant 0 : index
    %c96 = arith.constant 96 : index
    %10 = vector.load %arg1[%c0_3, %c96] : memref<2x128xf32, #tpu.memory_space<vmem>>, vector<2x32xf32>
    %11 = arith.addf %7, %10 : vector<2x32xf32>
    %12 = arith.mulf %10, %10 : vector<2x32xf32>
    %13 = arith.addf %9, %12 : vector<2x32xf32>
    %14 = arith.mulf %11, %11 : vector<2x32xf32>
    %15 = arith.subf %14, %13 : vector<2x32xf32>
    %cst = arith.constant 5.000000e-01 : f32
    %16 = vector.broadcast %cst : f32 to vector<2x32xf32>
    %17 = arith.mulf %16, %15 : vector<2x32xf32>
    %cst_4 = arith.constant dense<0.000000e+00> : vector<2xf32>
    %18 = vector.multi_reduction <add>, %17, %cst_4 [1] : vector<2x32xf32> to vector<2xf32>
    %19 = vector.shape_cast %18 : vector<2xf32> to vector<2x1xf32>
    %c0_5 = arith.constant 0 : index
    %c0_6 = arith.constant 0 : index
    %20 = vector.load %arg2[%c0_5, %c0_6] : memref<2x1xf32, #tpu.memory_space<vmem>>, vector<2x1xf32>
    tpu.vector_store %arg2[%c0_5, %c0_6], %19 {strides = array<i32>} : memref<2x1xf32, #tpu.memory_space<vmem>>, vector<2x1xf32>,
    return
  }
  func.func @transform_0(%arg0: i32) -> (i32, i32) {
    %c0_i32 = arith.constant 0 : i32
    %c0_i32_0 = arith.constant 0 : i32
    return %arg0, %c0_i32 : i32, i32
  }
  func.func @transform_1(%arg0: i32) -> (i32, i32) {
    %c0_i32 = arith.constant 0 : i32
    %c0_i32_0 = arith.constant 0 : i32
    return %arg0, %c0_i32 : i32, i32
  }
}

</mosaic_0001>

<bundles_post_ra>
// kernel: tpu_custom_call.1
= control target key start
LH: loop header
LB: loop body
LE: loop exit
PB: predicated region body
PF: predicated region fallthrough
CT: control target
= control target key end

     0   :  { %6 = vsyncpa [#allocation3], 0  ;;  %s90_s6 = smov [#allocation2]   ;;  %s119_s0 = inlined_call_operand.hbm [shape: f32[2,128], index: 0, kind: input, shape index: {}]   ;;  %s120_s1 = inlined_call_operand.vmem [shape: f32[2,1], index: 1, kind: output, shape index: {}]  }
   0x1   :  { %s13_s7 = sshll.u32 %s90_s6, 4  ;;  %s66_s10 = scalar_lea.hbm %s119_s0, 32  ;;  %s14_s7 = int_to_ptr.vmem [resolvable:$true] %s13_s7 }
   0x2   :  { %p67_p0 = scmp.ne.s32.totalorder %s119_s0, %s66_s10  ;;  %p70_p1 = scmp.lt.u32.totalorder %s66_s10, %s119_s0 }
   0x4   :  { %p72_p2 = pnand %p70_p1, %p67_p0 }
   0x6   :  { %75 = shalt.err (!%p72_p2)
}
   0x7   :  { %s76_s15 = scalar_lea.vmem %s14_s7, 32  ;;  %p81_p4 = scmp.lt.s32.totalorder %s14_s7, %s14_s7 }
   0x8   :  { %p77_p3 = scmp.ne.s32.totalorder %s14_s7, %s76_s15  ;;  %p82_p5 = scmp.lt.s32.totalorder %s76_s15, %s76_s15 }
   0xa   :  { %p83_p6 = por %p82_p5, %p81_p4 }
   0xc   :  { %p84_p7 = pnand %p83_p6, %p77_p3 }
   0xe   :  { %87 = shalt.err (!%p84_p7)
}
   0xf   :  { %16 = dma.hbm_to_vmem [thread:$0]  %s119_s0, 32, %s14_s7, [#allocation3]  }
  0x10   :  { %88 = dma.done.wait [#allocation3], 32  }
  0x11   :  { %89 = vsyncadd [#allocation3], 4294967264  ;;  %v20_v0 = vld [vmem:[#allocation2] sm:$0x3]  ;;  %s91_s18 = smov 64   ;;  %s92_s19 = smov 96  }
  0x12   :  { %32 = vrot.lane.b32.xlu1 %v20_v0, %s91_s18  ;;  %23 = vrot.lane.b32.xlu0 %v20_v0, %s92_s19  ;;  %v21_v1 = vmul.f32 %v20_v0, %v20_v0  ;;  %s93_s20 = smov 32   ;;  %vm51_vm0 = vcmask 254976   ;;  %vm55_vm1 = vcmask 1024  }
  0x16   :  { %36 = vrot.lane.b32.xlu1 %v21_v1, %s91_s18  ;;  %28 = vrot.lane.b32.xlu0 %v21_v1, %s92_s19 }
  0x1a   :  { %44 = vrot.lane.b32.xlu1 %v21_v1, %s93_s20  ;;  %40 = vrot.lane.b32.xlu0 %v20_v0, %s93_s20 }
  0x84   :  { %v33_v2 = vpop.permute.xlu1 %32  ;;  %v24_v3 = vpop.permute.xlu0 %23 }
  0x85   :  { %v26_v4 = vadd.f32 %v24_v3, %v20_v0 }
  0x87   :  { %v35_v9 = vadd.f32 %v33_v2, %v26_v4 }
  0x88   :  { %v37_v5 = vpop.permute.xlu1 %36  ;;  %v29_v6 = vpop.permute.xlu0 %28 }
  0x89   :  { %v31_v7 = vadd.f32 %v29_v6, %v21_v1 }
  0x8b   :  { %v39_v8 = vadd.f32 %v37_v5, %v31_v7 }
  0x8c   :  { %v45_v10 = vpop.permute.xlu1 %44  ;;  %v41_v11 = vpop.permute.xlu0 %40 }
  0x8d   :  { %v43_v12 = vadd.f32 %v41_v11, %v35_v9  ;;  %v47_v13 = vadd.f32 %v45_v10, %v39_v8 }
  0x8f   :  { %v48_v14 = vmul.f32 %v43_v12, %v43_v12 }
  0x91   :  { %v49_v15 = vsub.f32 %v48_v14, %v47_v13 }
  0x93   :  { %v50_v16 = vmul.f32 0.5, %v49_v15 }
  0x95   :  { %v52_v17 = vsel %vm51_vm0, %v50_v16, 0.0 }
  0x96   :  { %53 = vadd.xlane.f32.xlu0 %v52_v17 }
 0x123   :  { %v54_v18 = vpop.xlane.xlu0 %53 }
 0x124   :  { %56 = vst.msk [vmem:[%s120_s1] sm:$0x3] %vm55_vm1, %v54_v18 }
 0x125   :  { %61 = vsyncpa [#allocation3], 1 }

</bundles_post_ra>
